<compile_context>
chip_gen: v7x
topology: tpu7x:2x2x1
jax: 0.10.0
libtpu: 0.0.40
codegen_flags: <defaults>
</compile_context>

<pallas_src>
import jax
import jax.numpy as jnp
from jax.experimental import pallas as pl
from jax.experimental.pallas import tpu as pltpu


def _round_up(n, m):
    return pl.cdiv(n, m) * m


def _pick_batch_tile(B, block_b):
    """Pick the batch-tile (lane-axis) size; always a legal BlockSpec dim."""
    block_b = max(128, _round_up(block_b, 128))
    if B <= min(block_b, 4096):
        # Single block equal to the full array dims (always a legal block shape,
        # no boundary masking needed); tiny batches are latency-trivial anyway.
        return B
    # Aim for >= ~8 lane-aligned grid steps (feeds both v7x TensorCores and the
    # double-buffered DMA pipeline), capped by the requested block_b.
    return int(min(block_b, max(1024, _round_up(pl.cdiv(B, 8), 128))))


def _mlp_kernel(x_ref, w1_ref, b1_ref, w2_ref, b2_ref, w3c_ref, b3_ref, o_ref):
    x = x_ref[...]                                            # (bt, 8) native layout

    # Layer 1 + ReLU: contract features of (12,8) and (bt,8) -> (12, bt).
    # (trans_b contraction: batch goes straight onto the 128-lane axis.)
    h1 = jax.lax.dot_general(
        w1_ref[...], x,
        dimension_numbers=(((1,), (1,)), ((), ())),
        preferred_element_type=jnp.float32,
    ) + b1_ref[...]                                           # bias (12, 1) -> lanes
    h1 = jnp.maximum(h1, 0.0)

    # Layer 2 + ReLU: (8,12) @ (12,bt) -> (8, bt).
    h2 = jnp.dot(w2_ref[...], h1, preferred_element_type=jnp.float32) + b2_ref[...]
    h2 = jnp.maximum(h2, 0.0)

    # Layer 3 off the MXU: VPU multiply + XLU sublane reduce. w3c is (8, 1).
    z = jnp.sum(w3c_ref[...] * h2, axis=0, keepdims=True) + b3_ref[...]   # (1, bt)

    # Sigmoid: exp and approximate reciprocal both run on the (idle) EUP slot.
    o_ref[...] = pl.reciprocal(1.0 + jnp.exp(-z), approx=True).astype(o_ref.dtype)


def neuralnet_forward(x, params, block_b=16384):
    """x: (B, 8) float32; params: PyTorch-layout weights (out,in), biases (out,1).

    Returns (B, 1) float32, matching NeuralNet.forward.
    """
    w1, b1, w2, b2, w3, b3 = (params[k] for k in ("w1", "b1", "w2", "b2", "w3", "b3"))
    B, F = x.shape
    assert F == 8, "NeuralNet expects 8 input features"

    x = x.astype(jnp.float32)
    w3c = w3.T                      # (8, 1) column for the VPU/XLU output layer

    bt = _pick_batch_tile(B, block_b)
    grid = (pl.cdiv(B, bt),)        # no batch padding: last block is masked

    def resident(a):                # tiny constant operands: VMEM-resident
        return pl.BlockSpec(a.shape, lambda i: (0,) * a.ndim)

    out = pl.pallas_call(
        _mlp_kernel,
        out_shape=jax.ShapeDtypeStruct((1, B), jnp.float32),
        grid=grid,
        in_specs=[
            pl.BlockSpec((bt, F), lambda i: (i, 0)),      # x tiles, pipelined
            resident(w1), resident(b1),
            resident(w2), resident(b2),
            resident(w3c), resident(b3),
        ],
        out_specs=pl.BlockSpec((1, bt), lambda i: (0, i)),  # lane-dense output slab
        compiler_params=pltpu.CompilerParams(
            dimension_semantics=("parallel",),              # shard batch tiles over TCs
            vmem_limit_bytes=32 * 1024 * 1024,              # raise v5e's 16 MiB default
        ),
        cost_estimate=pl.CostEstimate(                      # tell XLA it's memory-bound
            flops=400 * B,
            transcendentals=2 * B,
            bytes_accessed=36 * B + 1024,
        ),
    )(x, w1, b1, w2, b2, w3c, b3)

    # (1, B) -> (B, 1): contiguous reshape, no data movement.
    return out.reshape(B, 1)


def init_params(key):
    """torch.nn.Linear-style init: uniform(+/- 1/sqrt(fan_in)), weights (out, in)."""
    def linear(key, fan_in, fan_out):
        kw, kb = jax.random.split(key)
        bound = 1.0 / jnp.sqrt(float(fan_in))
        w = jax.random.uniform(kw, (fan_out, fan_in), jnp.float32, -bound, bound)
        b = jax.random.uniform(kb, (fan_out, 1), jnp.float32, -bound, bound)
        return w, b

    k1, k2, k3 = jax.random.split(key, 3)
    w1, b1 = linear(k1, 8, 12)
    w2, b2 = linear(k2, 12, 8)
    w3, b3 = linear(k3, 8, 1)
    return {"w1": w1, "b1": b1, "w2": w2, "b2": b2, "w3": w3, "b3": b3}


def _reference(x, p):
    h1 = jnp.maximum(x @ p["w1"].T + p["b1"].T, 0.0)
    h2 = jnp.maximum(h1 @ p["w2"].T + p["b2"].T, 0.0)
    return jax.nn.sigmoid(h2 @ p["w3"].T + p["b3"].T)


if __name__ == "__main__":
    key = jax.random.PRNGKey(0)
    kx, kp = jax.random.split(key)
    params = init_params(kp)

    # Tiny batch consistent with the module (8 input features).
    x_small = jax.random.normal(kx, (8, 8), jnp.float32)
    out_small = jax.block_until_ready(neuralnet_forward(x_small, params))
    assert out_small.shape == (8, 1)
    assert jnp.allclose(out_small, _reference(x_small, params), atol=5e-3), "small-batch mismatch"

    # Non-multiple-of-128 batch, default tile: single full-array block, no padding.
    B_mid = 2048 + 37
    x_mid = jax.random.normal(jax.random.PRNGKey(1), (B_mid, 8), jnp.float32)
    out_mid = jax.block_until_ready(neuralnet_forward(x_mid, params))
    assert out_mid.shape == (B_mid, 1)
    assert jnp.allclose(out_mid, _reference(x_mid, params), atol=5e-3), "mid-batch mismatch"

    # Same batch with a small tile: multi-step pipelined grid + masked boundary
    # block (no wrapper-side padding anywhere).
    out_tiled = jax.block_until_ready(neuralnet_forward(x_mid, params, block_b=512))
    assert out_tiled.shape == (B_mid, 1)
    assert jnp.allclose(out_tiled, _reference(x_mid, params), atol=5e-3), "tiled-batch mismatch"

    print("KERNEL_OK")
</pallas_src>

<mosaic_0001>
module attributes {stable_mosaic.version = 11 : i64} {
  func.func @_mlp_kernel(%arg0: i32, %arg1: memref<8x8xf32, #tpu.memory_space<vmem>>, %arg2: memref<12x8xf32, #tpu.memory_space<vmem>>, %arg3: memref<12x1xf32, #tpu.memory_space<vmem>>, %arg4: memref<8x12xf32, #tpu.memory_space<vmem>>, %arg5: memref<8x1xf32, #tpu.memory_space<vmem>>, %arg6: memref<8x1xf32, #tpu.memory_space<vmem>>, %arg7: memref<1x1xf32, #tpu.memory_space<vmem>>, %arg8: memref<1x8xf32, #tpu.memory_space<vmem>>) attributes {dimension_semantics = [#tpu.dimension_semantics<parallel>], iteration_bounds = array<i64: 1>, scalar_prefetch = 0 : i64, scratch_operands = 0 : i64, tpu.core_type = #tpu.core_type<tc>, window_params = [{transform_indices = @transform_0, window_bounds = array<i64: 8, 8>}, {pipeline_mode = #tpu.pipeline_mode<synchronous>, transform_indices = @transform_1, window_bounds = array<i64: 12, 8>}, {pipeline_mode = #tpu.pipeline_mode<synchronous>, transform_indices = @transform_2, window_bounds = array<i64: 12, 1>}, {pipeline_mode = #tpu.pipeline_mode<synchronous>, transform_indices = @transform_3, window_bounds = array<i64: 8, 12>}, {pipeline_mode = #tpu.pipeline_mode<synchronous>, transform_indices = @transform_4, window_bounds = array<i64: 8, 1>}, {pipeline_mode = #tpu.pipeline_mode<synchronous>, transform_indices = @transform_5, window_bounds = array<i64: 8, 1>}, {pipeline_mode = #tpu.pipeline_mode<synchronous>, transform_indices = @transform_6, window_bounds = array<i64: 1, 1>}, {transform_indices = @transform_7, window_bounds = array<i64: 1, 8>}]} {
    %c0 = arith.constant 0 : index
    %c0_0 = arith.constant 0 : index
    %0 = vector.load %arg1[%c0, %c0_0] : memref<8x8xf32, #tpu.memory_space<vmem>>, vector<8x8xf32>
    %c0_1 = arith.constant 0 : index
    %c0_2 = arith.constant 0 : index
    %1 = vector.load %arg2[%c0_1, %c0_2] : memref<12x8xf32, #tpu.memory_space<vmem>>, vector<12x8xf32>
    %cst = arith.constant dense<0.000000e+00> : vector<12x8xf32>
    %2 = tpu.matmul %1, %0, %cst {dimension_numbers = #tpu.dot_dimension_numbers<[1], [1], [0], [0], [0, 0, 1, 0], [], []>} : vector<12x8xf32>, vector<8x8xf32>, vector<12x8xf32> -> vector<12x8xf32>
    %c0_3 = arith.constant 0 : index
    %c0_4 = arith.constant 0 : index
    %3 = vector.load %arg3[%c0_3, %c0_4] : memref<12x1xf32, #tpu.memory_space<vmem>>, vector<12x1xf32>
    %4 = vector.broadcast %3 : vector<12x1xf32> to vector<12x8xf32>
    %5 = arith.addf %2, %4 : vector<12x8xf32>
    %cst_5 = arith.constant 0.000000e+00 : f32
    %6 = vector.broadcast %cst_5 : f32 to vector<12x8xf32>
    %7 = arith.maximumf %5, %6 : vector<12x8xf32>
    %c0_6 = arith.constant 0 : index
    %c0_7 = arith.constant 0 : index
    %8 = vector.load %arg4[%c0_6, %c0_7] : memref<8x12xf32, #tpu.memory_space<vmem>>, vector<8x12xf32>
    %cst_8 = arith.constant dense<0.000000e+00> : vector<8x8xf32>
    %9 = tpu.matmul %8, %7, %cst_8 {dimension_numbers = #tpu.dot_dimension_numbers<[1], [0], [0], [1], [0, 0, 1, 1], [], []>} : vector<8x12xf32>, vector<12x8xf32>, vector<8x8xf32> -> vector<8x8xf32>
    %c0_9 = arith.constant 0 : index
    %c0_10 = arith.constant 0 : index
    %10 = vector.load %arg5[%c0_9, %c0_10] : memref<8x1xf32, #tpu.memory_space<vmem>>, vector<8x1xf32>
    %11 = vector.broadcast %10 : vector<8x1xf32> to vector<8x8xf32>
    %12 = arith.addf %9, %11 : vector<8x8xf32>
    %cst_11 = arith.constant 0.000000e+00 : f32
    %13 = vector.broadcast %cst_11 : f32 to vector<8x8xf32>
    %14 = arith.maximumf %12, %13 : vector<8x8xf32>
    %c0_12 = arith.constant 0 : index
    %c0_13 = arith.constant 0 : index
    %15 = vector.load %arg6[%c0_12, %c0_13] : memref<8x1xf32, #tpu.memory_space<vmem>>, vector<8x1xf32>
    %16 = vector.broadcast %15 : vector<8x1xf32> to vector<8x8xf32>
    %17 = arith.mulf %16, %14 : vector<8x8xf32>
    %cst_14 = arith.constant dense<0.000000e+00> : vector<8xf32>
    %18 = vector.multi_reduction <add>, %17, %cst_14 [0] : vector<8x8xf32> to vector<8xf32>
    %19 = vector.shape_cast %18 : vector<8xf32> to vector<1x8xf32>
    %c0_15 = arith.constant 0 : index
    %c0_16 = arith.constant 0 : index
    %20 = vector.load %arg7[%c0_15, %c0_16] : memref<1x1xf32, #tpu.memory_space<vmem>>, vector<1x1xf32>
    %21 = vector.broadcast %20 : vector<1x1xf32> to vector<1x8xf32>
    %22 = arith.addf %19, %21 : vector<1x8xf32>
    %cst_17 = arith.constant 0.000000e+00 : f32
    %23 = vector.broadcast %cst_17 : f32 to vector<1x8xf32>
    %24 = arith.subf %23, %22 : vector<1x8xf32>
    %25 = math.exp %24 : vector<1x8xf32>
    %cst_18 = arith.constant 1.000000e+00 : f32
    %26 = vector.broadcast %cst_18 : f32 to vector<1x8xf32>
    %27 = arith.addf %26, %25 : vector<1x8xf32>
    %28 = tpu.reciprocal %27 {approx = true} : vector<1x8xf32> -> vector<1x8xf32>
    %c0_19 = arith.constant 0 : index
    %c0_20 = arith.constant 0 : index
    %29 = vector.load %arg8[%c0_19, %c0_20] : memref<1x8xf32, #tpu.memory_space<vmem>>, vector<1x8xf32>
    tpu.vector_store %arg8[%c0_19, %c0_20], %28 {strides = array<i32>} : memref<1x8xf32, #tpu.memory_space<vmem>>, vector<1x8xf32>,
    return
  }
  func.func @transform_0(%arg0: i32) -> (i32, i32) {
    %c0_i32 = arith.constant 0 : i32
    %c0_i32_0 = arith.constant 0 : i32
    return %arg0, %c0_i32 : i32, i32
  }
  func.func @transform_1(%arg0: i32) -> (i32, i32) {
    %c0_i32 = arith.constant 0 : i32
    %c0_i32_0 = arith.constant 0 : i32
    %c0_i32_1 = arith.constant 0 : i32
    return %c0_i32, %c0_i32_0 : i32, i32
  }
  func.func @transform_2(%arg0: i32) -> (i32, i32) {
    %c0_i32 = arith.constant 0 : i32
    %c0_i32_0 = arith.constant 0 : i32
    %c0_i32_1 = arith.constant 0 : i32
    return %c0_i32, %c0_i32_0 : i32, i32
  }
  func.func @transform_3(%arg0: i32) -> (i32, i32) {
    %c0_i32 = arith.constant 0 : i32
    %c0_i32_0 = arith.constant 0 : i32
    %c0_i32_1 = arith.constant 0 : i32
    return %c0_i32, %c0_i32_0 : i32, i32
  }
  func.func @transform_4(%arg0: i32) -> (i32, i32) {
    %c0_i32 = arith.constant 0 : i32
    %c0_i32_0 = arith.constant 0 : i32
    %c0_i32_1 = arith.constant 0 : i32
    return %c0_i32, %c0_i32_0 : i32, i32
  }
  func.func @transform_5(%arg0: i32) -> (i32, i32) {
    %c0_i32 = arith.constant 0 : i32
    %c0_i32_0 = arith.constant 0 : i32
    %c0_i32_1 = arith.constant 0 : i32
    return %c0_i32, %c0_i32_0 : i32, i32
  }
  func.func @transform_6(%arg0: i32) -> (i32, i32) {
    %c0_i32 = arith.constant 0 : i32
    %c0_i32_0 = arith.constant 0 : i32
    %c0_i32_1 = arith.constant 0 : i32
    return %c0_i32, %c0_i32_0 : i32, i32
  }
  func.func @transform_7(%arg0: i32) -> (i32, i32) {
    %c0_i32 = arith.constant 0 : i32
    %c0_i32_0 = arith.constant 0 : i32
    return %c0_i32, %arg0 : i32, i32
  }
}

</mosaic_0001>

<bundles_post_ra>
// kernel: tpu_custom_call.1
= control target key start
LH: loop header
LB: loop body
LE: loop exit
PB: predicated region body
PF: predicated region fallthrough
CT: control target
= control target key end

     0   :  { %s416_s0 = inlined_call_operand.vmem [shape: f32[8,8], index: 0, kind: input, shape index: {}]   ;;  %s417_s1 = inlined_call_operand.vmem [shape: f32[12,8], index: 1, kind: input, shape index: {}]   ;;  %s418_s2 = inlined_call_operand.vmem [shape: f32[12,1], index: 2, kind: input, shape index: {}]   ;;  %s419_s3 = inlined_call_operand.vmem [shape: f32[8,12], index: 3, kind: input, shape index: {}]   ;;  %s420_s4 = inlined_call_operand.vmem [shape: f32[8,1], index: 4, kind: input, shape index: {}]   ;;  %s421_s5 = inlined_call_operand.vmem [shape: f32[8,1], index: 5, kind: input, shape index: {}]   ;;  %s422_s6 = inlined_call_operand.<no memory space> [shape: f32[1,1], index: 6, kind: input, shape index: {}]   ;;  %s423_s7 = inlined_call_operand.hbm [shape: f32[1,8], index: 7, kind: output, shape index: {}]  }
   0x1   :  { %v12_v0 = vstv %s422_s6 }
   0x2   :  { %13 = vst [vmem:[#allocation2] sm:$0x1] %v12_v0 }
   0x3   :  { %v29_v1 = vld [vmem:[%s416_s0] sm:$0xff]  ;;  %vm44_vm0 = vcmask 64512   ;;  %v31_v4 = vld [vmem:[%s417_s1 + $0x8] sm:$0xf]  ;;  %v326_v5 = vmov 0  }
   0x4   :  { %v30_v2 = vld [vmem:[%s417_s1] sm:$0xff]  ;;  %274 = vmatprep.subr.msk.mxu0 %vm44_vm0, %v29_v1  ;;  %296 = vset.pattern.permute.xlu0 %v326_v5 }
   0x5   :  { %276 = vmatprep.mubr.msk.f32.mxu0 %vm44_vm0, %v30_v2  ;;  %v32_v3 = vld [vmem:[%s418_s2] sm:$0xff]  ;;  %275 = vmatpush3.xpose.msk.msra.mxu0 %vm44_vm0, %v29_v1 }
   0x6   :  { %14 = vsyncpa [#allocation4], 0  ;;  %36 = vperm.xlu0 %296, %v32_v3   ;;  %297 = vset.pattern.permute.xlu1 %v326_v5  ;;  %v33_v6 = vld [vmem:[%s418_s2 + $0x8] sm:$0xf]  ;;  %v327_v8 = vmov 0.0|0.0   ;;  %vm328_vm1 = vmmov 0   ;;  %v237_v29 = vlaneseq }
   0x7   :  { %286 = vmatprep.subr.bf16.mxu1 %v327_v8  ;;  %v329_v9 = vmov 0.0   ;;  %v132_v10 = vld [vmem:[%s420_s4] sm:$0xff]  ;;  %vm142_vm2 = vcmask 1043456   ;;  %vm330_vm3 = vmmov 1   ;;  %vm138_vm5 = vcmask 97280  }
   0x8   :  { %277 = vmatmul.mubr.msk.f32.vlgmr.msra.gmra.mrb[0].mxu0 %vm44_vm0, %v31_v4  ;;  %283 = vmatprep.mubr.msk.f32.mxu1 %vm328_vm1, %v329_v9  ;;  %v217_v11 = vld [vmem:[%s421_s5] sm:$0xff]  ;;  %vm288_vm4 = vmpackc.low %vm142_vm2, %vm330_vm3  ;;  %v238_v32 = vshrl.u32 %v237_v29, 7  ;;  %vm247_vm6 = vcmask 57344  }
   0x9   :  { %v231_v7 = vld [vmem:[#allocation2] sm:$0x1]  ;;  %135 = vperm.xlu1 %297, %v132_v10  }
   0xa   :  { %41 = vperm.xlu0 %296, %v33_v6   ;;  %v131_v21 = vld [vmem:[%s419_s3] sm:$0xff]  ;;  %v239_v35 = vsub.s32 0, %v238_v32  ;;  %s331_s3 = smov [#allocation3]  }
   0xb   :  { %s255_s5 = sshll.u32 %s331_s3, 4  ;;  %s256_s5 = int_to_ptr.vmem [resolvable:$true] %s255_s5 }
   0xc   :  { %s302_s14 = scalar_lea.vmem %s256_s5, 16  ;;  %s306_s15 = scalar_lea.vmem %s256_s5, 32 }
   0xd   :  { %220 = vperm.xlu1 %297, %v217_v11   ;;  %p303_p0 = scmp.ne.s32.totalorder %s256_s5, %s302_s14  ;;  %p307_p1 = scmp.lt.s32.totalorder %s256_s5, %s256_s5 }
   0xe   :  { %234 = vperm.xlu0 %296, %v231_v7   ;;  %p308_p2 = scmp.lt.s32.totalorder %s306_s15, %s302_s14 }
  0x10   :  { %p309_p3 = por %p308_p2, %p307_p1 }
  0x12   :  { %p310_p4 = pnand %p309_p3, %p303_p0 }
  0x85   :  { %v37_v12 = vpop.permute.xlu0 %36 }
  0x88   :  { %v136_v22 = vpop.permute.xlu1 %135 }
  0x89   :  { %v42_v13 = vpop.permute.xlu0 %41 }
  0x8c   :  { %v221_v27 = vpop.permute.xlu1 %220 }
  0x8d   :  { %v235_v37 = vpop.permute.xlu0 %234 }
  0x8e   :  { %v240_v39 = vrot.slane %v235_v37, %v239_v35 }
  0xdb   :  { %v278_v14 = vpop.f32.mrb[0].mxu0 }
  0xdc   :  { %v126_v15 = vadd.f32 %v278_v14, %v42_v13  ;;  %v120_v16 = vpop.f32.mrb[1].mxu0 }
  0xdd   :  { %v121_v17 = vadd.f32 %v120_v16, %v37_v12 }
  0xde   :  { %v130_v18 = vmax.f32 %v126_v15, 0.0 }
  0xdf   :  { %v129_v19 = vmax.f32 %v121_v17, 0.0 }
  0xe1   :  { %v287_v20 = vpack.c.bf16 %v130_v18, %v129_v19 }
  0xe3   :  { %289 = vmatpush3.bf16.msk.msra.mxu1 %vm288_vm4, %v287_v20 }
  0xe6   :  { %284 = vmatmul.mubr.msk.f32.vlgmr.msra.gmra.mrb[0].mxu1 %vm138_vm5, %v131_v21 }
 0x1b9   :  { %v212_v23 = vpop.f32.mrb[0].mxu1 }
 0x1ba   :  { %v213_v24 = vadd.f32 %v212_v23, %v136_v22  ;;  %v285_v25 = vpop.f32.mrb[1].mxu1 }
 0x1bc   :  { %v216_v26 = vmax.f32 %v213_v24, 0.0 }
 0x1be   :  { %v223_v28 = vmul.f32 %v221_v27, %v216_v26 }
 0x1c0   :  { %v224_v30 = vsel %vm44_vm0, %v223_v28, 0.0 }
 0x1c1   :  { %v225_v31 = vrot.slane %v224_v30, 4 }
 0x1c3   :  { %v226_v33 = vadd.f32 %v225_v31, %v224_v30 }
 0x1c5   :  { %v227_v34 = vrot.slane %v226_v33, 2 }
 0x1c7   :  { %v228_v36 = vadd.f32 %v227_v34, %v226_v33 }
 0x1c9   :  { %v229_v38 = vrot.slane %v228_v36, 1 }
 0x1cb   :  { %v230_v40 = vadd.f32 %v229_v38, %v228_v36 }
 0x1cd   :  { %v241_v41 = vadd.f32 %v240_v39, %v230_v40 }
 0x1cf   :  { %v242_v42 = vsub.f32 0.0, %v241_v41 }
 0x1d1   :  { %v243_v43 = vmul.f32 1.442695, %v242_v42 }
 0x1d3   :  { %298 = vpow2.f32 %v243_v43 }
 0x1dd   :  { %v299_v44 = vpop.eup %298 }
 0x1de   :  { %v245_v45 = vadd.f32 1.0, %v299_v44 }
 0x1e0   :  { %300 = vrcp.f32 %v245_v45 }
 0x1ea   :  { %v301_v46 = vpop.eup %300 }
 0x1eb   :  { %248 = vst.msk [vmem:[#allocation3] sm:$0x1] %vm247_vm6, %v301_v46 }
 0x1ec   :  { %313 = shalt.err (!%p310_p4)
}
 0x1ed   :  { %s314_s18 = scalar_lea.hbm %s423_s7, 16 }
 0x1ee   :  { %p315_p5 = scmp.ne.s32.totalorder %s423_s7, %s314_s18  ;;  %p318_p6 = scmp.lt.u32.totalorder %s314_s18, %s423_s7 }
 0x1f0   :  { %p320_p7 = pnand %p318_p6, %p315_p5 }
 0x1f2   :  { %323 = shalt.err (!%p320_p7)
}
 0x1f3   :  { %258 = dma.vmem_to_hbm [thread:$0]  %s256_s5, 16, %s423_s7, [#allocation4]  }
 0x1f4   :  { %324 = dma.done.wait [#allocation4], 16  }
 0x1f5   :  { %325 = vsyncadd [#allocation4], 4294967280 }
 0x1f6   :  { %262 = vsyncpa [#allocation4], 1 }

</bundles_post_ra>
